<compile_context>
chip_gen: v6e
topology: v6e:2x2x1
jax: 0.10.0
libtpu: 0.0.40
codegen_flags: <defaults>
</compile_context>

<pallas_src>
import jax
import jax.numpy as jnp
from jax.experimental import pallas as pl
from jax.experimental.pallas import tpu as pltpu
from functools import partial

_LANE_CANDIDATES = (1024, 512, 256, 128)    # lane-dense widths, multiples of 128
_TARGET_BLOCK_BYTES = 8 * 1024 * 1024       # per-input DMA block (dtype-aware)
_CHUNK_F32_BYTES = 2 * 1024 * 1024          # in-kernel f32 compute chunk
_VMEM_LIMIT_BYTES = 48 * 1024 * 1024        # 2 in x 2 buf x 8 MiB + chunk scratch, < 64 MiB/TC (v7x)


def _lane_reduce_128(s):
    """(r, L) -> (r, 128) by summing lane groups.

    Static slices on 128-lane boundaries just pick whole vregs, so this is pure
    cross-vreg VPU adds (no XLU)."""
    L = s.shape[-1]
    acc = s[:, 0:128]
    for j in range(1, L // 128):
        acc = acc + s[:, j * 128:(j + 1) * 128]
    return acc


def _mse_partial_kernel(x_ref, t_ref, out_ref, *, rows, tm, gr, needs_mask, out_rows):
    """Write this block's partial sum of (x - t)^2 as an (out_rows, 128) tile."""
    i = pl.program_id(0)
    L = x_ref.shape[-1]

    if out_rows == 1:
        # Tiny-input path (grid == 1; rows < 8 or not a multiple of 8).
        d = x_ref[...].astype(jnp.float32) - t_ref[...].astype(jnp.float32)
        d2 = d * d
        out_ref[...] = _lane_reduce_128(jnp.sum(d2, axis=0, keepdims=True))
        return

    n_groups = tm // gr

    def body(g, acc):
        r0 = pl.multiple_of(g * gr, 8)
        x = x_ref[pl.ds(r0, gr), :].astype(jnp.float32)
        t = t_ref[pl.ds(r0, gr), :].astype(jnp.float32)
        d = x - t
        if needs_mask:
            # Zero rows past `rows` (ragged last block). Free VPU filler under
            # the DMA shadow; zeroing before the square kills any NaN garbage.
            row = jax.lax.broadcasted_iota(jnp.int32, d.shape, 0)
            d = jnp.where(i * tm + r0 + row < rows, d, 0.0)
        d2 = d * d
        # Sublane-group reduce: (gr, L) -> (gr//8, 8, L) -> (8, L).
        # Layout-preserving split on (8, *) tiles; pure cross-vreg VPU adds.
        s = d2.reshape(gr // 8, 8, L).sum(axis=0)
        return acc + _lane_reduce_128(s)             # (8, 128)

    out_ref[...] = jax.lax.fori_loop(0, n_groups, body,
                                     jnp.zeros((8, 128), jnp.float32))


def _sum_sq_diff_2d(x2, t2):
    """Sum of squared differences over a lane-dense (rows, L) slab via Pallas."""
    rows, L = x2.shape
    itemsize = x2.dtype.itemsize

    # Dtype-aware DMA block rows (multiple of 8).
    tm = max(8, (_TARGET_BLOCK_BYTES // (L * itemsize)) // 8 * 8)
    if tm >= rows:
        if rows >= 16:
            # Guarantee >= 2 grid steps so both v7x TensorCores stream HBM
            # (also buys DMA/compute overlap on single-core chips).
            tm = (((rows + 1) // 2) + 7) // 8 * 8
        else:
            tm = rows                       # degenerate tiny input, one block
    grid = pl.cdiv(rows, tm)
    needs_mask = (rows % tm) != 0
    out_rows = 8 if (tm >= 8 and tm % 8 == 0) else 1

    # In-kernel compute chunk: bounds f32 intermediates (~2 MiB) independent of
    # the (possibly much larger) DMA block. Must divide tm and be a multiple of 8.
    if out_rows == 8:
        gr = min(tm, max(8, (_CHUNK_F32_BYTES // (L * 4)) // 8 * 8))
        while tm % gr != 0:
            gr -= 8
    else:
        gr = tm

    kernel = partial(_mse_partial_kernel, rows=rows, tm=tm, gr=gr,
                     needs_mask=needs_mask, out_rows=out_rows)

    cost = pl.CostEstimate(
        flops=3 * rows * L,
        transcendentals=0,
        bytes_accessed=int(2 * rows * L * itemsize + grid * out_rows * 128 * 4),
    )

    partials = pl.pallas_call(
        kernel,
        out_shape=jax.ShapeDtypeStruct((grid * out_rows, 128), jnp.float32),
        grid_spec=pltpu.PrefetchScalarGridSpec(
            num_scalar_prefetch=0,
            grid=(grid,),
            in_specs=[
                pl.BlockSpec((tm, L), lambda i: (i, 0)),
                pl.BlockSpec((tm, L), lambda i: (i, 0)),
            ],
            out_specs=pl.BlockSpec((out_rows, 128), lambda i: (i, 0)),
        ),
        compiler_params=pltpu.CompilerParams(
            dimension_semantics=("parallel",),   # independent partials -> megacore OK
            vmem_limit_bytes=_VMEM_LIMIT_BYTES,
        ),
        cost_estimate=cost,
    )(x2, t2)

    # Tiny final reduction in plain JAX.
    return jnp.sum(partials)


def _mse_loss_fwd_impl(x, target):
    assert x.shape == target.shape, "input / target shape mismatch"
    total = x.size
    xf = x.reshape(-1)
    tf = target.reshape(-1)

    # Pick a lane width L (multiple of 128) that divides the element count,
    # preferring one that leaves >= 8 rows.
    L = None
    for cand in _LANE_CANDIDATES:
        if total % cand == 0 and total // cand >= 8:
            L = cand
            break
    if L is None:
        for cand in _LANE_CANDIDATES:
            if total % cand == 0:
                L = cand
                break

    if L is not None:
        rows = total // L
        ssq = _sum_sq_diff_2d(xf.reshape(rows, L), tf.reshape(rows, L))
    else:
        # total not a multiple of 128: kernel over the 128-aligned prefix, tail
        # (< 128 elements) folded in with a tiny jnp sum. No jnp.pad of the full
        # arrays -> no extra full-size HBM write before the kernel.
        main = (total // 128) * 128
        td = xf[main:].astype(jnp.float32) - tf[main:].astype(jnp.float32)
        ssq = jnp.sum(td * td)
        if main > 0:
            rows = main // 128
            ssq = ssq + _sum_sq_diff_2d(
                jax.lax.slice(xf, (0,), (main,)).reshape(rows, 128),
                jax.lax.slice(tf, (0,), (main,)).reshape(rows, 128),
            )

    return ssq / jnp.float32(total)


@jax.custom_vjp
def mse_loss_pallas(x, target):
    """MSE loss (mean over all elements) computed with a Pallas TPU kernel."""
    return _mse_loss_fwd_impl(x, target)


def _mse_vjp_fwd(x, target):
    return _mse_loss_fwd_impl(x, target), (x, target)


def _mse_vjp_bwd(res, g):
    x, target = res
    n = x.size
    gx = (2.0 * g / jnp.float32(n)) * (
        x.astype(jnp.float32) - target.astype(jnp.float32)
    )
    return gx.astype(x.dtype), (-gx).astype(target.dtype)


mse_loss_pallas.defvjp(_mse_vjp_fwd, _mse_vjp_bwd)


class ContentLoss:
    """JAX/Pallas port of the PyTorch ContentLoss module.

    forward(input) computes self.loss = mse(input, target) via the Pallas
    kernel and returns the input unchanged (identity pass-through), matching
    the PyTorch semantics (target is detached).
    """

    def __init__(self, target):
        self.target = jax.lax.stop_gradient(target)
        self.loss = None

    def forward(self, x):
        self.loss = mse_loss_pallas(x, self.target)
        return x

    __call__ = forward


if __name__ == "__main__":
    key = jax.random.PRNGKey(0)
    k1, k2 = jax.random.split(key)

    # Small NCHW shapes consistent with a conv feature map.
    B, C, H, W = 2, 4, 16, 16
    x = jax.random.normal(k1, (B, C, H, W), dtype=jnp.float32)
    target = jax.random.normal(k2, (B, C, H, W), dtype=jnp.float32)

    module = ContentLoss(target)
    out = module(x)
    out = jax.block_until_ready(out)
    loss = jax.block_until_ready(module.loss)

    # Cross-check against plain JAX reference (same semantics as F.mse_loss).
    ref = jnp.mean((x - target) ** 2)
    assert out.shape == x.shape
    assert jnp.allclose(out, x)
    assert jnp.allclose(loss, ref, rtol=1e-5, atol=1e-6), (loss, ref)

    # Gradient parity (custom VJP): d/dx mean((x-t)^2) = 2*(x-t)/N.
    gx = jax.block_until_ready(jax.grad(lambda inp: mse_loss_pallas(inp, target))(x))
    gref = 2.0 * (x - target) / x.size
    assert jnp.allclose(gx, gref, rtol=1e-5, atol=1e-6)

    print("KERNEL_OK")
</pallas_src>

<mosaic_0001>
module attributes {stable_mosaic.version = 11 : i64} {
  func.func @_mse_partial_kernel(%arg0: i32, %arg1: memref<8x256xf32, #tpu.memory_space<vmem>>, %arg2: memref<8x256xf32, #tpu.memory_space<vmem>>, %arg3: memref<8x128xf32, #tpu.memory_space<vmem>>) attributes {dimension_semantics = [#tpu.dimension_semantics<parallel>], iteration_bounds = array<i64: 1>, scalar_prefetch = 0 : i64, scratch_operands = 0 : i64, tpu.core_type = #tpu.core_type<tc>, window_params = [{transform_indices = @transform_0, window_bounds = array<i64: 8, 256>}, {transform_indices = @transform_1, window_bounds = array<i64: 8, 256>}, {transform_indices = @transform_2, window_bounds = array<i64: 8, 128>}]} {
    %cst = arith.constant 0.000000e+00 : f32
    %0 = vector.broadcast %cst : f32 to vector<8x128xf32>
    %c0_i32 = arith.constant 0 : i32
    %c8_i32 = arith.constant 8 : i32
    %1 = arith.muli %c0_i32, %c8_i32 : i32
    %2 = tpu.assume_multiple %1, 8 : i32
    %3 = arith.index_cast %2 : i32 to index
    %c0 = arith.constant 0 : index
    %4 = vector.load %arg1[%3, %c0] : memref<8x256xf32, #tpu.memory_space<vmem>>, vector<8x256xf32>
    %5 = arith.index_cast %2 : i32 to index
    %c0_0 = arith.constant 0 : index
    %6 = vector.load %arg2[%5, %c0_0] : memref<8x256xf32, #tpu.memory_space<vmem>>, vector<8x256xf32>
    %7 = arith.subf %4, %6 : vector<8x256xf32>
    %8 = arith.mulf %7, %7 : vector<8x256xf32>
    %9 = vector.shape_cast %8 : vector<8x256xf32> to vector<1x8x256xf32>
    %cst_1 = arith.constant dense<0.000000e+00> : vector<8x256xf32>
    %10 = vector.multi_reduction <add>, %9, %cst_1 [0] : vector<1x8x256xf32> to vector<8x256xf32>
    %11 = vector.extract_strided_slice %10 {offsets = [0, 0], sizes = [8, 128], strides = [1, 1]} : vector<8x256xf32> to vector<8x128xf32>
    %12 = vector.extract_strided_slice %10 {offsets = [0, 128], sizes = [8, 128], strides = [1, 1]} : vector<8x256xf32> to vector<8x128xf32>
    %13 = arith.addf %11, %12 : vector<8x128xf32>
    %14 = arith.addf %0, %13 : vector<8x128xf32>
    %c1_i32 = arith.constant 1 : i32
    %c0_2 = arith.constant 0 : index
    %c0_3 = arith.constant 0 : index
    %15 = vector.load %arg3[%c0_2, %c0_3] : memref<8x128xf32, #tpu.memory_space<vmem>>, vector<8x128xf32>
    tpu.vector_store %arg3[%c0_2, %c0_3], %14 {strides = array<i32>} : memref<8x128xf32, #tpu.memory_space<vmem>>, vector<8x128xf32>,
    return
  }
  func.func @transform_0(%arg0: i32) -> (i32, i32) {
    %c0_i32 = arith.constant 0 : i32
    %c0_i32_0 = arith.constant 0 : i32
    return %arg0, %c0_i32 : i32, i32
  }
  func.func @transform_1(%arg0: i32) -> (i32, i32) {
    %c0_i32 = arith.constant 0 : i32
    %c0_i32_0 = arith.constant 0 : i32
    return %arg0, %c0_i32 : i32, i32
  }
  func.func @transform_2(%arg0: i32) -> (i32, i32) {
    %c0_i32 = arith.constant 0 : i32
    %c0_i32_0 = arith.constant 0 : i32
    return %arg0, %c0_i32 : i32, i32
  }
}

</mosaic_0001>

<bundles_post_ra>
// kernel: tpu_custom_call.1
= control target key start
LH: loop header
LB: loop body
LE: loop exit
PB: predicated region body
PF: predicated region fallthrough
CT: control target
= control target key end

     0   :  { %7 = vsyncpa [#allocation3], 0  ;;  %s166_s0 = inlined_call_operand.hbm [shape: f32[8,256], index: 0, kind: input, shape index: {}]   ;;  %s167_s1 = inlined_call_operand.hbm [shape: f32[8,256], index: 1, kind: input, shape index: {}]   ;;  %s168_s2 = inlined_call_operand.hbm [shape: f32[8,128], index: 2, kind: output, shape index: {}]  }
   0x1   :  { %8 = vsyncpa [#allocation6], 0 }
   0x2   :  { %9 = vsyncpa [#allocation4], 0  ;;  %s139_s9 = smov [#allocation2]   ;;  %s140_s11 = smov [#allocation5]  }
   0x3   :  { %s16_s10 = sshll.u32 %s139_s9, 4  ;;  %s26_s12 = sshll.u32 %s140_s11, 4  ;;  %s17_s10 = int_to_ptr.vmem [resolvable:$true] %s16_s10  ;;  %s27_s12 = int_to_ptr.vmem [resolvable:$true] %s26_s12 }
   0x4   :  { %s81_s13 = scalar_lea.vmem %s17_s10, 256  ;;  %p86_p1 = scmp.lt.s32.totalorder %s17_s10, %s17_s10 }
   0x5   :  { %p82_p0 = scmp.ne.s32.totalorder %s17_s10, %s81_s13  ;;  %p87_p2 = scmp.lt.s32.totalorder %s81_s13, %s81_s13 }
   0x7   :  { %p88_p3 = por %p87_p2, %p86_p1 }
   0x9   :  { %p89_p4 = pnand %p88_p3, %p82_p0 }
   0xb   :  { %92 = shalt.err (!%p89_p4)
}
   0xc   :  { %19 = dma.hbm_to_vmem [thread:$0]  %s166_s0, 256, %s17_s10, [#allocation3]  }
   0xd   :  { %s101_s16 = scalar_lea.vmem %s27_s12, 256  ;;  %p106_p6 = scmp.lt.s32.totalorder %s27_s12, %s27_s12 }
   0xe   :  { %p102_p5 = scmp.ne.s32.totalorder %s27_s12, %s101_s16  ;;  %p107_p7 = scmp.lt.s32.totalorder %s101_s16, %s101_s16 }
  0x10   :  { %p108_p8 = por %p107_p7, %p106_p6 }
  0x12   :  { %p109_p9 = pnand %p108_p8, %p102_p5 }
  0x14   :  { %112 = shalt.err (!%p109_p9)
}
  0x15   :  { %29 = dma.hbm_to_vmem [thread:$0]  %s167_s1, 256, %s27_s12, [#allocation6]  }
  0x16   :  { %133 = dma.done.wait [#allocation3], 256  }
  0x17   :  { %134 = vsyncadd [#allocation3], 4294967040 }
  0x18   :  { %135 = dma.done.wait [#allocation6], 256  }
  0x19   :  { %136 = vsyncadd [#allocation6], 4294967040  ;;  %v39_v0 = vld [vmem:[#allocation2] sm:$0xff]  ;;  %v40_v1 = vld [vmem:[#allocation2 + $0x8] sm:$0xff]  ;;  %s141_s0 = smov [#allocation7]  }
  0x1a   :  { %v43_v2 = vld [vmem:[#allocation5] sm:$0xff]  ;;  %v44_v3 = vld [vmem:[#allocation5 + $0x8] sm:$0xff]  ;;  %s60_s19 = sshll.u32 %s141_s0, 4  ;;  %s61_s19 = int_to_ptr.vmem [resolvable:$true] %s60_s19 }
  0x1b   :  { %v45_v4 = vsub.f32 %v39_v0, %v43_v2  ;;  %v46_v5 = vsub.f32 %v40_v1, %v44_v3  ;;  %s113_s20 = scalar_lea.vmem %s61_s19, 128  ;;  %p118_p11 = scmp.lt.s32.totalorder %s61_s19, %s61_s19 }
  0x1c   :  { %p114_p10 = scmp.ne.s32.totalorder %s61_s19, %s113_s20  ;;  %p119_p12 = scmp.lt.s32.totalorder %s113_s20, %s113_s20 }
  0x1d   :  { %v47_v6 = vmul.f32 %v45_v4, %v45_v4  ;;  %v48_v7 = vmul.f32 %v46_v5, %v46_v5 }
  0x1e   :  { %p120_p13 = por %p119_p12, %p118_p11 }
  0x1f   :  { %v51_v8 = vadd.f32 %v48_v7, %v47_v6 }
  0x20   :  { %p121_p0 = pnand %p120_p13, %p114_p10 }
  0x21   :  { %53 = vst [vmem:[#allocation7] sm:$0xff] %v51_v8 }
  0x22   :  { %124 = shalt.err (!%p121_p0)
}
  0x23   :  { %63 = dma.vmem_to_hbm [thread:$0]  %s61_s19, 128, %s168_s2, [#allocation4]  }
  0x24   :  { %137 = dma.done.wait [#allocation4], 128  }
  0x25   :  { %138 = vsyncadd [#allocation4], 4294967168 }
  0x26   :  { %67 = vsyncpa [#allocation3], 1 }
  0x27   :  { %68 = vsyncpa [#allocation6], 1 }
  0x28   :  { %69 = vsyncpa [#allocation4], 1 }

</bundles_post_ra>
